<compile_context>
chip_gen: v7x
topology: tpu7x:2x2x1
jax: 0.10.0
libtpu: 0.0.40
codegen_flags: <defaults>
</compile_context>

<pallas_src>
import functools

import jax
import jax.numpy as jnp
from jax import lax
from jax.experimental import pallas as pl
from jax.experimental.pallas import tpu as pltpu


def _chebygin_fused_kernel(x_ref, a_ref, mrow_ref,
                           w1t_ref, b1_ref, w2t_ref, b2_ref, wct_ref, bc_ref,
                           logits_ref, y1_ref, *, K, Bt, N, F_in, F1, F2, C):
    f32 = jnp.float32
    R = Bt * N

    # ---- normalized Laplacian, fully batched over the Bt graphs ------------
    A = a_ref[...].astype(f32)                          # (Bt, N, N)
    if K == 1:                                          # add_identity=True path
        row = lax.broadcasted_iota(jnp.int32, (N, N), 0)
        col = lax.broadcasted_iota(jnp.int32, (N, N), 1)
        A = A + (row == col).astype(f32)[None]
    # torch: D = sum_i A[:, i, :].  Undirected (symmetric) adjacency is assumed
    # so the (N,1) factor comes from a row-sum reduce -> no transpose needed.
    d_row = jnp.sum(A, axis=2, keepdims=True)           # (Bt, N, 1)
    d_col = jnp.sum(A, axis=1, keepdims=True)           # (Bt, 1, N)
    L = lax.rsqrt(d_row + 1e-5) * A * lax.rsqrt(d_col + 1e-5)
    # For K > 1 torch uses -L; the (-1)^k Chebyshev sign is folded into the
    # odd-order rows of W^T by the wrapper, so +L is used everywhere here.

    m_rows = mrow_ref[0].astype(f32)                    # (R, 1) node mask

    # ---- one ChebyGINLayer (aggregation='mean', n_hidden=0, ReLU) ----------
    # TODO(synk): aggregation='sum' (GIN degree rescaling) and n_hidden>0 MLP
    # are not implemented; this config uses 'mean' and n_hidden=0.
    def cheby_fc(x3, F_prev, wt_ref, b_ref):
        # x3: (Bt, N, F_prev).  Chebyshev basis via batched MXU matmuls.
        if K == 1:
            Ts = [jnp.einsum('bij,bjf->bif', L, x3, preferred_element_type=f32)]
        else:
            Ts = [x3,
                  jnp.einsum('bij,bjf->bif', L, x3, preferred_element_type=f32)]
            for _ in range(2, K):
                Ts.append(2.0 * jnp.einsum('bij,bjf->bif', L, Ts[-1],
                                           preferred_element_type=f32) - Ts[-2])
        # k-major lane concat == torch .view(B, N, K*F); a single fused FC
        # matmul of contraction depth K*F_prev (instead of K shallow matmuls).
        xcat = jnp.concatenate([t.reshape(R, F_prev) for t in Ts], axis=1)
        h = jnp.dot(xcat, wt_ref[...], preferred_element_type=f32) + b_ref[...]
        h = jnp.maximum(h, 0.0)                         # nn.ReLU(True)
        return h * m_rows                               # y = y * mask, (R, F_out)

    # layer 1: F_in -> F1 (its output is also returned by the module)
    y1_flat = cheby_fc(x_ref[...].astype(f32), F_in, w1t_ref, b1_ref)
    y1_ref[0] = y1_flat.astype(y1_ref.dtype)

    # layer 2: F1 -> F2 (never leaves VMEM)
    y2_flat = cheby_fc(y1_flat.reshape(Bt, N, F1), F1, w2t_ref, b2_ref)

    # GraphReadout('max') as one batched sublane reduce, then the classifier.
    r = jnp.max(y2_flat.reshape(Bt, N, F2), axis=1)     # (Bt, F2)
    logits = jnp.dot(r, wct_ref[...], preferred_element_type=f32) + bc_ref[...]
    logits_ref[0] = logits.astype(logits_ref.dtype)


def chebygin_original_forward(x, A, mask, params, K=2, block_b=64):
    """Forward of ChebyGINOriginal(in_features=F, out_features=C,
    filters=[F1, F2], K=K, aggregation='mean', readout='max', pool=None,
    n_hidden=0, dropout=0).  Returns (logits (B, C), y1 (B, N, F1)), matching
    torch's `return (y, data[4])`.
    """
    B, N, F_in = x.shape
    W1, b1 = params["W1"], params["b1"]
    W2, b2 = params["W2"], params["b2"]
    Wc, bc = params["Wc"], params["bc"]
    F1, F2, C = W1.shape[0], W2.shape[0], Wc.shape[0]

    # Batch tile: big tiles amortize the ~0.35us/step pipeline overhead and give
    # the row-stacked FCs Bt*N-row matmuls; capping Bt at ceil(B/2) keeps the
    # grid >= 2 steps so both v7x TensorCores get work (harmless on v5e/v6e).
    Bt = max(1, min(block_b, B))
    if B >= 2:
        Bt = min(Bt, (B + 1) // 2)
    n_steps = -(-B // Bt)
    Bp = n_steps * Bt

    mask2 = mask.reshape(B, N).astype(jnp.float32)
    if Bp != B:                       # padded graphs: A = 0, mask = 0, sliced away
        pad = Bp - B
        x = jnp.pad(x, ((0, pad), (0, 0), (0, 0)))
        A = jnp.pad(A, ((0, pad), (0, 0), (0, 0)))
        mask2 = jnp.pad(mask2, ((0, pad), (0, 0)))
    mask_rows = mask2.reshape(n_steps, Bt * N, 1)

    # Fold the Chebyshev sign (T_k(-L) = (-1)^k T_k(L)) into the odd-order row
    # slices of W^T so the kernel never negates the (N, N) Laplacian tiles.
    def signed_wt(W, F_prev):
        Wt = W.T.astype(jnp.float32)                    # (K*F_prev, F_out)
        if K > 1:
            sign = jnp.repeat(
                jnp.where(jnp.arange(K) % 2 == 0, 1.0, -1.0).astype(jnp.float32),
                F_prev)
            Wt = Wt * sign[:, None]
        return Wt

    kernel = functools.partial(_chebygin_fused_kernel, K=K, Bt=Bt, N=N,
                               F_in=F_in, F1=F1, F2=F2, C=C)

    logits3, y13 = pl.pallas_call(
        kernel,
        out_shape=(jax.ShapeDtypeStruct((n_steps, Bt, C), jnp.float32),
                   jax.ShapeDtypeStruct((n_steps, Bt * N, F1), jnp.float32)),
        grid=(n_steps,),
        in_specs=[
            pl.BlockSpec((Bt, N, F_in), lambda s: (s, 0, 0)),
            pl.BlockSpec((Bt, N, N), lambda s: (s, 0, 0)),
            pl.BlockSpec((1, Bt * N, 1), lambda s: (s, 0, 0)),
            pl.BlockSpec((K * F_in, F1), lambda s: (0, 0)),   # W1^T (resident)
            pl.BlockSpec((1, F1), lambda s: (0, 0)),
            pl.BlockSpec((K * F1, F2), lambda s: (0, 0)),     # W2^T (resident)
            pl.BlockSpec((1, F2), lambda s: (0, 0)),
            pl.BlockSpec((F2, C), lambda s: (0, 0)),          # Wc^T (resident)
            pl.BlockSpec((1, C), lambda s: (0, 0)),
        ],
        out_specs=(
            pl.BlockSpec((1, Bt, C), lambda s: (s, 0, 0)),
            pl.BlockSpec((1, Bt * N, F1), lambda s: (s, 0, 0)),
        ),
        compiler_params=pltpu.CompilerParams(
            dimension_semantics=("parallel",)),
    )(x, A, mask_rows,
      signed_wt(W1, F_in), b1.reshape(1, F1),
      signed_wt(W2, F1), b2.reshape(1, F2),
      Wc.T.astype(jnp.float32), bc.reshape(1, C))

    logits = logits3.reshape(Bp, C)[:B]
    y1 = y13.reshape(Bp, N, F1)[:B]
    return logits, y1


# --------------------------- pure-JAX reference -----------------------------
def _ref_forward(x, A, mask, params, K):
    hp = lax.Precision.HIGHEST

    def layer(xin, W, b):
        B, N, F = xin.shape
        A_ = A + jnp.eye(N, dtype=A.dtype)[None] if K == 1 else A
        D = jnp.sum(A_, axis=1)
        D_hat = (D + 1e-5) ** -0.5
        L = D_hat[:, :, None] * A_ * D_hat[:, None, :]
        if K != 1:
            L = -L
        if K == 1:
            Xt = jnp.matmul(L, xin, precision=hp)[:, :, None, :]
        else:
            Xs = [xin, jnp.matmul(L, xin, precision=hp)]
            for _ in range(2, K):
                Xs.append(2.0 * jnp.matmul(L, Xs[-1], precision=hp) - Xs[-2])
            Xt = jnp.stack(Xs, axis=2)                   # (B, N, K, F)
        y = jnp.einsum("bnk,ok->bno", Xt.reshape(B, N, K * F), W,
                       precision=hp) + b
        return jnp.maximum(y, 0.0) * mask.reshape(B, N, 1)

    y1 = layer(x, params["W1"], params["b1"])
    y2 = layer(y1, params["W2"], params["b2"])
    r = jnp.max(y2, axis=1)
    logits = jnp.einsum("bf,of->bo", r, params["Wc"], precision=hp) + params["bc"]
    return logits, y1


def _linear_init(key, fan_in, fan_out):
    # Deterministic stand-in for torch.nn.Linear default init.
    k1, k2 = jax.random.split(key)
    bound = 1.0 / jnp.sqrt(jnp.float32(fan_in))
    W = jax.random.uniform(k1, (fan_out, fan_in), jnp.float32, -bound, bound)
    b = jax.random.uniform(k2, (fan_out,), jnp.float32, -bound, bound)
    return W, b


if __name__ == "__main__":
    B, N, F_in = 2, 16, 4
    filters = [32, 32]
    out_features = 3
    K = 2

    key = jax.random.PRNGKey(0)
    ks = jax.random.split(key, 8)

    # Inputs: node features, symmetric binary adjacency (zero diagonal), node mask
    x = jax.random.normal(ks[0], (B, N, F_in), jnp.float32)
    A_raw = jax.random.uniform(ks[1], (B, N, N), jnp.float32)
    A = (A_raw + jnp.transpose(A_raw, (0, 2, 1))) * 0.5
    A = (A > 0.5).astype(jnp.float32) * (1.0 - jnp.eye(N, dtype=jnp.float32)[None])
    n_valid = jnp.array([N, N - 4])
    mask = (jnp.arange(N)[None, :] < n_valid[:, None]).astype(jnp.float32).reshape(B, N, 1)
    x = x * mask

    # Parameters: ChebyGINLayer fc = Linear(K*F_in, f0), Linear(K*f0, f1);
    # final classifier Linear(f1, out_features).  dropout=0 -> no-op.
    W1, b1 = _linear_init(ks[2], F_in * K, filters[0])
    W2, b2 = _linear_init(ks[3], filters[0] * K, filters[1])
    Wc, bc = _linear_init(ks[4], filters[1], out_features)
    params = dict(W1=W1, b1=b1, W2=W2, b2=b2, Wc=Wc, bc=bc)

    fwd = jax.jit(functools.partial(chebygin_original_forward, K=K))
    logits, y1 = fwd(x, A, mask, params)
    jax.block_until_ready((logits, y1))

    assert logits.shape == (B, out_features)
    assert y1.shape == (B, N, filters[0])

    ref_logits, ref_y1 = _ref_forward(x, A, mask, params, K)
    assert jnp.allclose(logits, ref_logits, rtol=2e-3, atol=2e-3), "logits mismatch"
    assert jnp.allclose(y1, ref_y1, rtol=2e-3, atol=2e-3), "y1 mismatch"

    print("KERNEL_OK")
</pallas_src>

<mosaic_0001>
module attributes {stable_mosaic.version = 11 : i64} {
  func.func @_chebygin_fused_kernel(%arg0: i32, %arg1: memref<1x16x4xf32, #tpu.memory_space<vmem>>, %arg2: memref<1x16x16xf32, #tpu.memory_space<vmem>>, %arg3: memref<1x16x1xf32, #tpu.memory_space<vmem>>, %arg4: memref<8x32xf32, #tpu.memory_space<vmem>>, %arg5: memref<1x32xf32, #tpu.memory_space<vmem>>, %arg6: memref<64x32xf32, #tpu.memory_space<vmem>>, %arg7: memref<1x32xf32, #tpu.memory_space<vmem>>, %arg8: memref<32x3xf32, #tpu.memory_space<vmem>>, %arg9: memref<1x3xf32, #tpu.memory_space<vmem>>, %arg10: memref<1x1x3xf32, #tpu.memory_space<vmem>>, %arg11: memref<1x16x32xf32, #tpu.memory_space<vmem>>) attributes {dimension_semantics = [#tpu.dimension_semantics<parallel>], iteration_bounds = array<i64: 2>, scalar_prefetch = 0 : i64, scratch_operands = 0 : i64, tpu.core_type = #tpu.core_type<tc>, window_params = [{transform_indices = @transform_0, window_bounds = array<i64: 1, 16, 4>}, {transform_indices = @transform_1, window_bounds = array<i64: 1, 16, 16>}, {transform_indices = @transform_2, window_bounds = array<i64: 1, 16, 1>}, {pipeline_mode = #tpu.pipeline_mode<synchronous>, transform_indices = @transform_3, window_bounds = array<i64: 8, 32>}, {pipeline_mode = #tpu.pipeline_mode<synchronous>, transform_indices = @transform_4, window_bounds = array<i64: 1, 32>}, {pipeline_mode = #tpu.pipeline_mode<synchronous>, transform_indices = @transform_5, window_bounds = array<i64: 64, 32>}, {pipeline_mode = #tpu.pipeline_mode<synchronous>, transform_indices = @transform_6, window_bounds = array<i64: 1, 32>}, {pipeline_mode = #tpu.pipeline_mode<synchronous>, transform_indices = @transform_7, window_bounds = array<i64: 32, 3>}, {pipeline_mode = #tpu.pipeline_mode<synchronous>, transform_indices = @transform_8, window_bounds = array<i64: 1, 3>}, {transform_indices = @transform_9, window_bounds = array<i64: 1, 1, 3>}, {transform_indices = @transform_10, window_bounds = array<i64: 1, 16, 32>}]} {
    %c0 = arith.constant 0 : index
    %c0_0 = arith.constant 0 : index
    %c0_1 = arith.constant 0 : index
    %0 = vector.load %arg2[%c0, %c0_0, %c0_1] : memref<1x16x16xf32, #tpu.memory_space<vmem>>, vector<1x16x16xf32>
    %cst = arith.constant dense<0.000000e+00> : vector<1x16xf32>
    %1 = vector.multi_reduction <add>, %0, %cst [2] : vector<1x16x16xf32> to vector<1x16xf32>
    %2 = vector.shape_cast %1 : vector<1x16xf32> to vector<1x16x1xf32>
    %cst_2 = arith.constant dense<0.000000e+00> : vector<1x16xf32>
    %3 = vector.multi_reduction <add>, %0, %cst_2 [1] : vector<1x16x16xf32> to vector<1x16xf32>
    %4 = vector.shape_cast %3 : vector<1x16xf32> to vector<1x1x16xf32>
    %cst_3 = arith.constant 9.99999974E-6 : f32
    %5 = vector.broadcast %cst_3 : f32 to vector<1x16x1xf32>
    %6 = arith.addf %2, %5 : vector<1x16x1xf32>
    %7 = math.rsqrt %6 : vector<1x16x1xf32>
    %8 = vector.broadcast %7 : vector<1x16x1xf32> to vector<1x16x16xf32>
    %9 = arith.mulf %8, %0 : vector<1x16x16xf32>
    %cst_4 = arith.constant 9.99999974E-6 : f32
    %10 = vector.broadcast %cst_4 : f32 to vector<1x1x16xf32>
    %11 = arith.addf %4, %10 : vector<1x1x16xf32>
    %12 = math.rsqrt %11 : vector<1x1x16xf32>
    %13 = vector.broadcast %12 : vector<1x1x16xf32> to vector<1x16x16xf32>
    %14 = arith.mulf %9, %13 : vector<1x16x16xf32>
    %c0_5 = arith.constant 0 : index
    %c0_6 = arith.constant 0 : index
    %c0_7 = arith.constant 0 : index
    %15 = vector.load %arg3[%c0_5, %c0_6, %c0_7] : memref<1x16x1xf32, #tpu.memory_space<vmem>>, vector<1x16x1xf32>
    %16 = vector.shape_cast %15 : vector<1x16x1xf32> to vector<16x1xf32>
    %c0_8 = arith.constant 0 : index
    %c0_9 = arith.constant 0 : index
    %c0_10 = arith.constant 0 : index
    %17 = vector.load %arg1[%c0_8, %c0_9, %c0_10] : memref<1x16x4xf32, #tpu.memory_space<vmem>>, vector<1x16x4xf32>
    "tpu.trace_start"() <{level = 10 : i32, message = "bij,bjf->bif"}> : () -> ()
    %cst_11 = arith.constant dense<0.000000e+00> : vector<1x16x4xf32>
    %18 = tpu.matmul %14, %17, %cst_11 {dimension_numbers = #tpu.dot_dimension_numbers<[2], [1], [1], [2], [0, 0, 0, 1, 1, 2], [0], [0]>} : vector<1x16x16xf32>, vector<1x16x4xf32>, vector<1x16x4xf32> -> vector<1x16x4xf32>
    "tpu.trace_stop"() : () -> ()
    %19 = vector.shape_cast %17 : vector<1x16x4xf32> to vector<16x4xf32>
    %20 = vector.shape_cast %18 : vector<1x16x4xf32> to vector<16x4xf32>
    %21 = tpu.concatenate %19, %20 in 1 : vector<16x4xf32>, vector<16x4xf32> -> vector<16x8xf32>
    %c0_12 = arith.constant 0 : index
    %c0_13 = arith.constant 0 : index
    %22 = vector.load %arg4[%c0_12, %c0_13] : memref<8x32xf32, #tpu.memory_space<vmem>>, vector<8x32xf32>
    %cst_14 = arith.constant dense<0.000000e+00> : vector<16x32xf32>
    %23 = tpu.matmul %21, %22, %cst_14 {dimension_numbers = #tpu.dot_dimension_numbers<[1], [0], [0], [1], [0, 0, 1, 1], [], []>} : vector<16x8xf32>, vector<8x32xf32>, vector<16x32xf32> -> vector<16x32xf32>
    %c0_15 = arith.constant 0 : index
    %c0_16 = arith.constant 0 : index
    %24 = vector.load %arg5[%c0_15, %c0_16] : memref<1x32xf32, #tpu.memory_space<vmem>>, vector<1x32xf32>
    %25 = vector.broadcast %24 : vector<1x32xf32> to vector<16x32xf32>
    %26 = arith.addf %23, %25 : vector<16x32xf32>
    %cst_17 = arith.constant 0.000000e+00 : f32
    %27 = vector.broadcast %cst_17 : f32 to vector<16x32xf32>
    %28 = arith.maximumf %26, %27 : vector<16x32xf32>
    %29 = vector.broadcast %16 : vector<16x1xf32> to vector<16x32xf32>
    %30 = arith.mulf %28, %29 : vector<16x32xf32>
    %c0_18 = arith.constant 0 : index
    %c0_19 = arith.constant 0 : index
    %c0_20 = arith.constant 0 : index
    %31 = vector.load %arg11[%c0_18, %c0_19, %c0_20] : memref<1x16x32xf32, #tpu.memory_space<vmem>>, vector<1x16x32xf32>
    %32 = vector.shape_cast %31 : vector<1x16x32xf32> to vector<16x32xf32>
    %33 = vector.shape_cast %30 : vector<16x32xf32> to vector<1x16x32xf32>
    tpu.vector_store %arg11[%c0_18, %c0_19, %c0_20], %33 {strides = array<i32>} : memref<1x16x32xf32, #tpu.memory_space<vmem>>, vector<1x16x32xf32>,
    %34 = vector.shape_cast %30 : vector<16x32xf32> to vector<1x16x32xf32>
    "tpu.trace_start"() <{level = 10 : i32, message = "bij,bjf->bif"}> : () -> ()
    %cst_21 = arith.constant dense<0.000000e+00> : vector<1x16x32xf32>
    %35 = tpu.matmul %14, %34, %cst_21 {dimension_numbers = #tpu.dot_dimension_numbers<[2], [1], [1], [2], [0, 0, 0, 1, 1, 2], [0], [0]>} : vector<1x16x16xf32>, vector<1x16x32xf32>, vector<1x16x32xf32> -> vector<1x16x32xf32>
    "tpu.trace_stop"() : () -> ()
    %36 = vector.shape_cast %34 : vector<1x16x32xf32> to vector<16x32xf32>
    %37 = vector.shape_cast %35 : vector<1x16x32xf32> to vector<16x32xf32>
    %38 = tpu.concatenate %36, %37 in 1 : vector<16x32xf32>, vector<16x32xf32> -> vector<16x64xf32>
    %c0_22 = arith.constant 0 : index
    %c0_23 = arith.constant 0 : index
    %39 = vector.load %arg6[%c0_22, %c0_23] : memref<64x32xf32, #tpu.memory_space<vmem>>, vector<64x32xf32>
    %cst_24 = arith.constant dense<0.000000e+00> : vector<16x32xf32>
    %40 = tpu.matmul %38, %39, %cst_24 {dimension_numbers = #tpu.dot_dimension_numbers<[1], [0], [0], [1], [0, 0, 1, 1], [], []>} : vector<16x64xf32>, vector<64x32xf32>, vector<16x32xf32> -> vector<16x32xf32>
    %c0_25 = arith.constant 0 : index
    %c0_26 = arith.constant 0 : index
    %41 = vector.load %arg7[%c0_25, %c0_26] : memref<1x32xf32, #tpu.memory_space<vmem>>, vector<1x32xf32>
    %42 = vector.broadcast %41 : vector<1x32xf32> to vector<16x32xf32>
    %43 = arith.addf %40, %42 : vector<16x32xf32>
    %cst_27 = arith.constant 0.000000e+00 : f32
    %44 = vector.broadcast %cst_27 : f32 to vector<16x32xf32>
    %45 = arith.maximumf %43, %44 : vector<16x32xf32>
    %46 = vector.broadcast %16 : vector<16x1xf32> to vector<16x32xf32>
    %47 = arith.mulf %45, %46 : vector<16x32xf32>
    %48 = vector.shape_cast %47 : vector<16x32xf32> to vector<1x16x32xf32>
    %cst_28 = arith.constant dense<0xFF800000> : vector<1x32xf32>
    %49 = vector.multi_reduction <maximumf>, %48, %cst_28 [1] : vector<1x16x32xf32> to vector<1x32xf32>
    %c0_29 = arith.constant 0 : index
    %c0_30 = arith.constant 0 : index
    %50 = vector.load %arg8[%c0_29, %c0_30] : memref<32x3xf32, #tpu.memory_space<vmem>>, vector<32x3xf32>
    %cst_31 = arith.constant dense<0.000000e+00> : vector<1x3xf32>
    %51 = tpu.matmul %49, %50, %cst_31 {dimension_numbers = #tpu.dot_dimension_numbers<[1], [0], [0], [1], [0, 0, 1, 1], [], []>} : vector<1x32xf32>, vector<32x3xf32>, vector<1x3xf32> -> vector<1x3xf32>
    %c0_32 = arith.constant 0 : index
    %c0_33 = arith.constant 0 : index
    %52 = vector.load %arg9[%c0_32, %c0_33] : memref<1x3xf32, #tpu.memory_space<vmem>>, vector<1x3xf32>
    %53 = arith.addf %51, %52 : vector<1x3xf32>
    %c0_34 = arith.constant 0 : index
    %c0_35 = arith.constant 0 : index
    %c0_36 = arith.constant 0 : index
    %54 = vector.load %arg10[%c0_34, %c0_35, %c0_36] : memref<1x1x3xf32, #tpu.memory_space<vmem>>, vector<1x1x3xf32>
    %55 = vector.shape_cast %54 : vector<1x1x3xf32> to vector<1x3xf32>
    %56 = vector.shape_cast %53 : vector<1x3xf32> to vector<1x1x3xf32>
    tpu.vector_store %arg10[%c0_34, %c0_35, %c0_36], %56 {strides = array<i32>} : memref<1x1x3xf32, #tpu.memory_space<vmem>>, vector<1x1x3xf32>,
    return
  }
  func.func @transform_0(%arg0: i32) -> (i32, i32, i32) {
    %c0_i32 = arith.constant 0 : i32
    %c0_i32_0 = arith.constant 0 : i32
    %c0_i32_1 = arith.constant 0 : i32
    return %arg0, %c0_i32, %c0_i32_0 : i32, i32, i32
  }
  func.func @transform_1(%arg0: i32) -> (i32, i32, i32) {
    %c0_i32 = arith.constant 0 : i32
    %c0_i32_0 = arith.constant 0 : i32
    %c0_i32_1 = arith.constant 0 : i32
    return %arg0, %c0_i32, %c0_i32_0 : i32, i32, i32
  }
  func.func @transform_2(%arg0: i32) -> (i32, i32, i32) {
    %c0_i32 = arith.constant 0 : i32
    %c0_i32_0 = arith.constant 0 : i32
    %c0_i32_1 = arith.constant 0 : i32
    return %arg0, %c0_i32, %c0_i32_0 : i32, i32, i32
  }
  func.func @transform_3(%arg0: i32) -> (i32, i32) {
    %c0_i32 = arith.constant 0 : i32
    %c0_i32_0 = arith.constant 0 : i32
    %c0_i32_1 = arith.constant 0 : i32
    return %c0_i32, %c0_i32_0 : i32, i32
  }
  func.func @transform_4(%arg0: i32) -> (i32, i32) {
    %c0_i32 = arith.constant 0 : i32
    %c0_i32_0 = arith.constant 0 : i32
    %c0_i32_1 = arith.constant 0 : i32
    return %c0_i32, %c0_i32_0 : i32, i32
  }
  func.func @transform_5(%arg0: i32) -> (i32, i32) {
    %c0_i32 = arith.constant 0 : i32
    %c0_i32_0 = arith.constant 0 : i32
    %c0_i32_1 = arith.constant 0 : i32
    return %c0_i32, %c0_i32_0 : i32, i32
  }
  func.func @transform_6(%arg0: i32) -> (i32, i32) {
    %c0_i32 = arith.constant 0 : i32
    %c0_i32_0 = arith.constant 0 : i32
    %c0_i32_1 = arith.constant 0 : i32
    return %c0_i32, %c0_i32_0 : i32, i32
  }
  func.func @transform_7(%arg0: i32) -> (i32, i32) {
    %c0_i32 = arith.constant 0 : i32
    %c0_i32_0 = arith.constant 0 : i32
    %c0_i32_1 = arith.constant 0 : i32
    return %c0_i32, %c0_i32_0 : i32, i32
  }
  func.func @transform_8(%arg0: i32) -> (i32, i32) {
    %c0_i32 = arith.constant 0 : i32
    %c0_i32_0 = arith.constant 0 : i32
    %c0_i32_1 = arith.constant 0 : i32
    return %c0_i32, %c0_i32_0 : i32, i32
  }
  func.func @transform_9(%arg0: i32) -> (i32, i32, i32) {
    %c0_i32 = arith.constant 0 : i32
    %c0_i32_0 = arith.constant 0 : i32
    %c0_i32_1 = arith.constant 0 : i32
    return %arg0, %c0_i32, %c0_i32_0 : i32, i32, i32
  }
  func.func @transform_10(%arg0: i32) -> (i32, i32, i32) {
    %c0_i32 = arith.constant 0 : i32
    %c0_i32_0 = arith.constant 0 : i32
    %c0_i32_1 = arith.constant 0 : i32
    return %arg0, %c0_i32, %c0_i32_0 : i32, i32, i32
  }
}

</mosaic_0001>

<bundles_post_ra>
// kernel: mul.13
= control target key start
LH: loop header
LB: loop body
LE: loop exit
PB: predicated region body
PF: predicated region fallthrough
CT: control target
= control target key end

     0   :  { %vm7_vm0 = vcmask 261120   ;;  %vm13_vm1 = vcmask 523520   ;;  %s39_s0 = inlined_call_operand.vmem [shape: f32[2,32], index: 0, kind: input, shape index: {}]   ;;  %s40_s1 = inlined_call_operand.vmem [shape: f32[64], index: 1, kind: output, shape index: {}]  }
   0x1   :  { %v4_v0 = vld [vmem:[%s39_s0] sm:$0x3]  ;;  %s22_s0 = smov 32  }
   0x2   :  { %5 = vst [vmem:[#allocation1] sm:$0x3] %v4_v0 }
   0x9   :  { %v10_v1 = vld [vmem:[#allocation1 + $0x1] sm:$0x1]   ;;  %v6_v2 = vld [vmem:[#allocation1] sm:$0x1]  }
   0xa   :  { %11 = vrot.lane.b32.xlu0 %v10_v1, %s22_s0  ;;  %8 = vst.msk [vmem:[#allocation0] sm:$0x1] %vm7_vm0, %v6_v2  }
  0x7c   :  { %v12_v3 = vpop.permute.xlu0 %11  }
  0x7d   :  { %14 = vst.msk [vmem:[#allocation0] sm:$0x1] %vm13_vm1, %v12_v3  }
  0x84   :  { %v18_v4 = vld [vmem:[#allocation0] sm:$0x1] }
  0x85   :  { %20 = vst [vmem:[%s40_s1] sm:$0x1] %v18_v4 }

// kernel: mul.9
= control target key start
LH: loop header
LB: loop body
LE: loop exit
PB: predicated region body
PF: predicated region fallthrough
CT: control target
= control target key end

     0   :  { %vm7_vm0 = vcmask 31744   ;;  %vm13_vm1 = vcmask 64544   ;;  %s39_s0 = inlined_call_operand.vmem [shape: f32[2,4], index: 0, kind: input, shape index: {}]   ;;  %s40_s1 = inlined_call_operand.vmem [shape: f32[8], index: 1, kind: output, shape index: {}]  }
   0x1   :  { %v4_v0 = vld [vmem:[%s39_s0] sm:$0x3]  ;;  %s22_s0 = smov 4  }
   0x2   :  { %5 = vst [vmem:[#allocation1] sm:$0x3] %v4_v0 }
   0x9   :  { %v10_v1 = vld [vmem:[#allocation1 + $0x1] sm:$0x1]   ;;  %v6_v2 = vld [vmem:[#allocation1] sm:$0x1]  }
   0xa   :  { %11 = vrot.lane.b32.xlu0 %v10_v1, %s22_s0  ;;  %8 = vst.msk [vmem:[#allocation0] sm:$0x1] %vm7_vm0, %v6_v2  }
  0x7c   :  { %v12_v3 = vpop.permute.xlu0 %11  }
  0x7d   :  { %14 = vst.msk [vmem:[#allocation0] sm:$0x1] %vm13_vm1, %v12_v3  }
  0x84   :  { %v18_v4 = vld [vmem:[#allocation0] sm:$0x1] }
  0x85   :  { %20 = vst [vmem:[%s40_s1] sm:$0x1] %v18_v4 }

// kernel: chebygin_original_forward.1
= control target key start
LH: loop header
LB: loop body
LE: loop exit
PB: predicated region body
PF: predicated region fallthrough
CT: control target
= control target key end

     0   :  { %s1637_s0 = inlined_call_operand.vmem [shape: f32[2,16,4], index: 0, kind: input, shape index: {}]   ;;  %s1638_s1 = inlined_call_operand.vmem [shape: f32[2,16,16], index: 1, kind: input, shape index: {}]   ;;  %s1639_s2 = inlined_call_operand.vmem [shape: f32[2,16,1], index: 2, kind: input, shape index: {}]   ;;  %s1640_s3 = inlined_call_operand.vmem [shape: f32[8,32], index: 3, kind: input, shape index: {}]   ;;  %s1641_s4 = inlined_call_operand.vmem [shape: f32[1,32], index: 4, kind: input, shape index: {}]   ;;  %s1642_s5 = inlined_call_operand.vmem [shape: f32[64,32], index: 5, kind: input, shape index: {}]   ;;  %s1643_s6 = inlined_call_operand.vmem [shape: f32[1,32], index: 6, kind: input, shape index: {}]   ;;  %s1644_s7 = inlined_call_operand.vmem [shape: f32[32,3], index: 7, kind: input, shape index: {}]   ;;  %s1645_s8 = inlined_call_operand.vmem [shape: f32[1,3], index: 8, kind: input, shape index: {}]   ;;  %s1646_s9 = inlined_call_operand.hbm [shape: f32[2,1,3], index: 9, kind: output, shape index: {0}]   ;;  %s1647_s10 = inlined_call_operand.hbm [shape: f32[2,16,32], index: 10, kind: output, shape index: {1}]  }
   0x1   :  { %1648 = sst [smem:[#allocation8_spill]] %s1637_s0 }
   0x2   :  { %1649 = sst [smem:[#allocation9_spill]] %s1638_s1 }
   0x3   :  { %1650 = sst [smem:[#allocation10_spill]] %s1639_s2 }
   0x4   :  { %16 = vsyncpa [#allocation3], 0 }
   0x5   :  { %18 = vsyncpa [#allocation3 + $0x1], 0 }
   0x6   :  { %19 = vsyncpa [#allocation5], 0 }
   0x7   :  { %21 = vsyncpa [#allocation5 + $0x1], 0  ;;  %s1415_s13 = smov 0   ;;  %s1417_s14 = smov 0  }
   0x8   :  { %s1419_s15 = smov 0   ;;  %s1421_s16 = smov 0  }
   0x9 LB: > { %s1436_s17 = sadd.s32 4294967295, %s1348_s16   ;;  %s1057_s18 = sadd.s32 4294967294, %s1348_s16   ;;  %s1348_s16 = sphi %s1421_s16, %s1659_s16   ;;  %s1344_s15 = sphi %s1419_s15, %s1658_s15   ;;  %s1340_s14 = sphi %s1417_s14, %s1657_s14   ;;  %s1336_s13 = sphi %s1415_s13, %s1656_s13  }
   0xa   : > { %s1440_s19 = sadd.s32 1, %s1348_s16   ;;  %s238_s20 = sadd.s32 1, %s1344_s15 }
   0xb   : > { %s235_s21 = ssub.s32 %s1348_s16, %s1440_s19  ;;  %p248_p0 = scmp.ne.s32.totalorder %s1344_s15, %s1340_s14 }
   0xc   : > { %p236_p1 = scmp.eq.s32.totalorder %s235_s21, 0  ;;  %p249_p2 = scmp.eq.s32.totalorder %s1436_s17, 1 }
   0xd   : > { %p254_p3 = scmp.ne.s32.totalorder %s1340_s14, %s1336_s13  ;;  %p255_p4 = scmp.eq.s32.totalorder %s1057_s18, 1 }
   0xe   : > { %s1451_s22 = scalar_select %p236_p1, %s1344_s15, %s238_s20  }
   0xf   : > { %p1453_p5 = por %p249_p2, %p248_p0  ;;  %p1457_p6 = por %p255_p4, %p254_p3 }
  0x10   : > { %p1060_p7 = scmp.ge.s32.totalorder %s1348_s16, 1  ;;  %p341_p8 = scmp.lt.s32.totalorder %s1348_s16, 3 }
  0x12   : > { %p342_p9 = pnand %p1060_p7, %p341_p8 }
  0x13   : > { %p393_p10 = scmp.lt.s32.totalorder (!%p342_p9), %s1436_s17, 1  ;;  %vm410_vm0 = vcmask (!%p342_p9), 130048   ;;  %s1653_s1 = sld [smem:[#allocation9_spill]] (!%p342_p9)  ;;  %v530_v26 = vld [vmem:[%s1640_s3] sm:$0xff] (!%p342_p9)  ;;  %v1350_v27 = vmov (!%p342_p9), 0   ;;  %vm527_vm1 = vcmask (!%p342_p9), 31744  }
  0x14   : > { %345 = sbr.rel (%p342_p9) target bundleno = 1549 (0x60d), region = 56  ;;  %s1654_s0 = sld [smem:[#allocation8_spill]] (!%p342_p9)  ;;  %1122 = vmatprep.subr.mxu1 (!%p342_p9), %v530_v26  ;;  %1247 = vset.pattern.permute.xlu1 (!%p342_p9), %v1350_v27  ;;  %vm538_vm2 = vcmask (!%p342_p9), 64512   ;;  %v1070_v36 = vld [vmem:[%s1641_s4] ss:$0 sm:$0xff] (!%p342_p9)  ;;  %vm634_vm3 = vcmask (!%p342_p9), 261120  }
  0x15   : > { %1123 = vmatpush3.msra.mxu1 (!%p342_p9), %v530_v26  ;;  %s1655_s2 = sld [smem:[#allocation10_spill]] (!%p342_p9)  ;;  %1246 = vset.pattern.permute.xlu0 (!%p342_p9), %v1350_v27  ;;  %s1351_s28 = smov (!%p342_p9), 4   ;;  %v722_v48 = vld [vmem:[%s1642_s5] sm:$0xff] (!%p342_p9)  ;;  %v723_v49 = vld [vmem:[%s1642_s5 + $0x8] sm:$0xff] (!%p342_p9)  ;;  %v724_v50 = vld [vmem:[%s1642_s5 + $0x10] sm:$0xff] (!%p342_p9)  ;;  %vm737_vm4 = vcmask (!%p342_p9), 523264  }
  0x16   : > { %s1491_s30 = sand.u32 (!%p342_p9), 1, %s1340_s14   ;;  %v1172_v51 = vpack.c.bf16 (!%p342_p9), %v723_v49, %v722_v48  ;;  %v725_v52 = vld [vmem:[%s1642_s5 + $0x18] sm:$0xff] (!%p342_p9)  ;;  %v726_v54 = vld [vmem:[%s1642_s5 + $0x20] sm:$0xff] (!%p342_p9)  ;;  %v727_v55 = vld [vmem:[%s1642_s5 + $0x28] sm:$0xff] (!%p342_p9)  ;;  %vm1354_vm5 = vmmov (!%p342_p9), 0  }
  0x17   : > { %s1061_s11 = sshll.u32 (!%p342_p9), %s1491_s30, 4  ;;  %v1176_v53 = vpack.c.bf16 (!%p342_p9), %v725_v52, %v724_v50  ;;  %v1180_v56 = vpack.c.bf16 (!%p342_p9), %v727_v55, %v726_v54  ;;  %v728_v57 = vld [vmem:[%s1642_s5 + $0x30] sm:$0xff] (!%p342_p9)  ;;  %v729_v58 = vld [vmem:[%s1642_s5 + $0x38] sm:$0xff] (!%p342_p9)  ;;  %s917_s21 = scalar_lea.sflag (!%p342_p9), [#allocation5], %s1491_s30 }
  0x18   : > { %v1184_v59 = vpack.c.bf16 (!%p342_p9), %v729_v58, %v728_v57 }
  0x1b   : > { %s394_s25 = scalar_select %p393_p10, %s1436_s17, 1 }
  0x1d   : > { %s1465_s26 = sshll.u32 %s394_s25, 4 }
  0x1e   : > { %s402_s29 = scalar_lea.vmem %s1653_s1, %s1465_s26  ;;  %s397_s12 = scalar_lea.vmem %s1654_s0, %s1465_s26 }
  0x1f   : > { %v408_v0 = vld [vmem:[%s402_s29] sm:$0xff]  ;;  %v409_v1 = vld [vmem:[%s402_s29 + $0x8] sm:$0xff]  ;;  %s407_s27 = scalar_lea.vmem %s1655_s2, %s1465_s26  ;;  %s1352_s0 = smov 32  }
  0x20   : > { %v411_v2 = vsel %vm410_vm0, %v408_v0, 0.0  ;;  %v414_v3 = vsel %vm410_vm0, %v409_v1, 0.0  ;;  %v436_v5 = vld [vmem:[%s397_s12] sm:$0xff]  ;;  %v437_v6 = vld [vmem:[%s397_s12 + $0x8] sm:$0xff]  ;;  %s1500_s12 = scalar_lea.vmem [#allocation4], %s1061_s11  ;;  %s1088_s29 = sshll.u32 %s1436_s17, 8 }
  0x21   : > { %412 = vadd.xlane.f32.xlu0 %v411_v2  ;;  %v417_v4 = vadd.f32 %v414_v3, %v411_v2  ;;  %v1164_v7 = vpack.c.bf16 %v437_v6, %v436_v5  ;;  %v434_v28 = vld [vmem:[%s407_s27] sm:$0xff]  ;;  %v435_v31 = vld [vmem:[%s407_s27 + $0x8] sm:$0xff]  ;;  %s943_s26 = sshll.u32 %s1500_s12, 4  ;;  %s1560_s20 = scalar_lea.hbm %s1647_s10, %s1088_s29  ;;  %s1554_s26 = int_to_ptr.vmem [resolvable:$true] %s943_s26 }
  0x22   : > { %v832_v2 = vld [vmem:[%s1644_s7] sm:$0xff]  ;;  %s1254_s25 = scalar_lea.vmem %s1554_s26, 256  ;;  %s1356_s27 = smov [#allocation4]  }
  0x23   : > { %1165 = vmatprep.subr.bf16.mxu0 %v1164_v7  ;;  %v418_v8 = vrot.slane %v417_v4, 4  ;;  %p1255_p11 = scmp.ne.s32.totalorder %s1554_s26, %s1254_s25 }
  0x24   : > { %1167 = vmatpush3.bf16.msra.mxu0 %v1164_v7  ;;  %v835_v7 = vld [vmem:[%s1644_s7 + $0x18] sm:$0xff] }
  0x25   : > { %415 = vadd.xlane.f32.xlu0 %v414_v3  ;;  %v419_v9 = vadd.f32 %v418_v8, %v417_v4  ;;  %1173 = vmatprep.subr.bf16.mxu0 %v1172_v51  ;;  %v833_v3 = vld [vmem:[%s1644_s7 + $0x8] sm:$0xff]  ;;  %p1256_p12 = pnand %p1255_p11, %p1453_p5 }
  0x26   : > { %v1189_v4 = vpack.c.bf16 %v833_v3, %v832_v2 }
  0x27   : > { %v420_v10 = vrot.slane %v419_v9, 2  ;;  %p1257_p13 = pneg %p1256_p12 }
  0x29   : > { %v421_v11 = vadd.f32 %v420_v10, %v419_v9  ;;  %v1355_v9 = vmov 0.0   ;;  %v1075_v10 = vld [vmem:[%s1643_s6] ss:$0 sm:$0xff] }
  0x2b   : > { %v422_v12 = vrot.slane %v421_v11, 1 }
  0x2d   : > { %v423_v13 = vadd.f32 %v422_v12, %v421_v11 }
  0x2f   : > { %v430_v14 = vadd.f32 1e-05, %v423_v13 }
  0x31   : > { %1248 = vrsqrt.f32 %v430_v14 }
  0x3b   : > { %v1249_v19 = vpop.eup %1248  ;;  %624 = vperm.xlu0 %1246, %v434_v28  }
  0xae   : > { %v413_v15 = vpop.xlane.xlu0 %412 }
  0xaf   : > { %v424_v16 = vadd.f32 1e-05, %v413_v15 }
  0xb1   : > { %1250 = vrsqrt.f32 %v424_v16 }
  0xb2   : > { %v416_v17 = vpop.xlane.xlu0 %415 }
  0xb3   : > { %v425_v18 = vadd.f32 1e-05, %v416_v17 }
  0xb5   : > { %1252 = vrsqrt.f32 %v425_v18 }
  0xba   : > { %v1496_v43 = vpop.permute.xlu0 %624 }
  0xbb   : > { %v1251_v20 = vpop.eup %1250 }
  0xbc   : > { %v428_v21 = vmul.f32 %v1251_v20, %v408_v0 }
  0xbe   : > { %v432_v22 = vmul.f32 %v1249_v19, %v428_v21 }
  0xbf   : > { %v1253_v23 = vpop.eup %1252 }
  0xc0   : > { %1119 = vmatprep.mubr.msk.f32.mxu0 %vm410_vm0, %v432_v22  ;;  %v429_v24 = vmul.f32 %v1253_v23, %v409_v1 }
  0xc2   : > { %v433_v25 = vmul.f32 %v1249_v19, %v429_v24 }
  0xc4   : > { %1120 = vmatmul.mubr.msk.f32.vlgmr.msra.gmra.mrb[0].mxu0 %vm410_vm0, %v433_v25 }
  0xc5   : > { %1175 = vmatpush3.bf16.msra.mxu0 %v1172_v51 }
  0xc6   : > { %1177 = vmatprep.subr.bf16.mxu0 %v1176_v53 }
  0xc9   : > { %1179 = vmatpush3.bf16.msra.mxu0 %v1176_v53 }
  0xca   : > { %1181 = vmatprep.subr.bf16.mxu0 %v1180_v56 }
  0xcd   : > { %1183 = vmatpush3.bf16.msra.mxu0 %v1180_v56 }
  0xce   : > { %1185 = vmatprep.subr.bf16.mxu0 %v1184_v59 }
  0xd1   : > { %1187 = vmatpush3.bf16.msra.mxu0 %v1184_v59 }
 0x197   : > { %v1121_v29 = vpop.f32.mrb[0].mxu0 }
 0x198   : > { %v510_v30 = vpop.f32.mrb[1].mxu0 }
 0x199   : > { %521 = vrot.lane.b32.xlu1 %v510_v30, %s1351_s28 }
 0x19d   : > { %523 = vrot.lane.b32.xlu1 %v1121_v29, %s1351_s28  ;;  %s1258_s28 = sshll.u32 %s1356_s27, 4  ;;  %s1259_s28 = int_to_ptr.vmem [resolvable:$false] %s1258_s28 }
 0x19e   : > { %p1261_p0 = scmp.lt.s32.totalorder %s1554_s26, %s1259_s28 }
 0x1a1   : > { %629 = vperm.xlu1 %1247, %v435_v31  }
 0x20b   : > { %v522_v32 = vpop.permute.xlu1 %521 }
 0x20c   : > { %v528_v33 = vsel %vm527_vm1, %v436_v5, %v522_v32  ;;  %v1353_v5 = vmov 0.0|0.0  }
 0x20d   : > { %1124 = vmatprep.mubr.msk.f32.mxu1 %vm538_vm2, %v528_v33 }
 0x20f   : > { %v524_v34 = vpop.permute.xlu1 %523 }
 0x210   : > { %v529_v35 = vsel %vm527_vm1, %v437_v6, %v524_v34  ;;  %v834_v6 = vld [vmem:[%s1644_s7 + $0x10] sm:$0xff] }
 0x211   : > { %1125 = vmatmul.mubr.msk.f32.vlgmr.msra.gmra.mrb[0].mxu1 %vm538_vm2, %v529_v35  ;;  %v1192_v8 = vpack.c.bf16 %v835_v7, %v834_v6 }
 0x212   : > { %1131 = vmatprep.mubr.msk.f32.mxu1 %vm410_vm0, %v432_v22 }
 0x220   : > { %v1494_v41 = vpop.permute.xlu1 %629 }
 0x2e4   : > { %v1126_v37 = vpop.f32.mrb[0].mxu1 }
 0x2e5   : > { %v617_v38 = vadd.f32 %v1126_v37, %v1070_v36  ;;  %v611_v39 = vpop.f32.mrb[1].mxu1 }
 0x2e6   : > { %v612_v40 = vadd.f32 %v1070_v36, %v611_v39 }
 0x2e7   : > { %v621_v42 = vmax.f32 %v617_v38, 0.0 }
 0x2e8   : > { %v620_v44 = vmax.f32 %v612_v40, 0.0 }
 0x2e9   : > { %v633_v45 = vmul.f32 %v1494_v41, %v621_v42 }
 0x2ea   : > { %v632_v46 = vmul.f32 %v1496_v43, %v620_v44 }
 0x2eb   : > { %636 = vst.msk [vmem:[%s1500_s12 + $0x8] sm:$0xff] %vm634_vm3, %v633_v45 }
 0x2ec   : > { %635 = vst.msk [vmem:[%s1500_s12] sm:$0xff] %vm634_vm3, %v632_v46  ;;  %v1168_v47 = vpack.c.bf16 %v633_v45, %v632_v46  ;;  %s1260_s12 = scalar_lea.vmem %s1259_s28, 512 }
 0x2ed   : > { %p1262_p1 = scmp.lt.s32.totalorder %s1260_s12, %s1254_s25 }
 0x2ee   : > { %1169 = vmatprep.subr.bf16.mxu1 %v1168_v47 }
 0x2ef   : > { %1171 = vmatpush3.bf16.msra.mxu1 %v1168_v47  ;;  %p1263_p2 = por %p1262_p1, %p1261_p0 }
 0x2f0   : > { %1188 = vmatprep.subr.bf16.mxu1 %v1353_v5 }
 0x2f1   : > { %p1264_p3 = pnand %p1263_p2, %p1257_p13 }
 0x2f2   : > { %1132 = vmatmul.mubr.msk.f32.vlgmr.msra.gmra.mrb[2].mxu1 %vm410_vm0, %v433_v25 }
 0x2f3   : > { %1190 = vmatpush3.bf16.msra.mxu1 %v1189_v4  ;;  %1161 = vmatprep.mubr.msk.f32.mxu1 %vm1354_vm5, %v1355_v9 }
 0x2f4   : > { %1191 = vmatprep.subr.bf16.mxu1 %v1353_v5 }
 0x2f7   : > { %1193 = vmatpush3.bf16.msra.mxu1 %v1192_v8 }
 0x3c5   : > { %v1133_v60 = vpop.f32.mrb[2].mxu1 }
 0x3c6   : > { %v703_v61 = vpop.f32.mrb[3].mxu1 }
 0x3c7   : > { %714 = vrot.lane.b32.xlu1 %v703_v61, %s1352_s0 }
 0x3cb   : > { %716 = vrot.lane.b32.xlu1 %v1133_v60, %s1352_s0 }
 0x439   : > { %v715_v62 = vpop.permute.xlu1 %714 }
 0x43a   : > { %v720_v63 = vsel %vm634_vm3, %v632_v46, %v715_v62 }
 0x43b   : > { %1150 = vmatprep.mubr.msk.f32.mxu0 %vm737_vm4, %v720_v63 }
 0x43d   : > { %v717_v0 = vpop.permute.xlu1 %716 }
 0x43e   : > { %v721_v1 = vsel %vm634_vm3, %v633_v45, %v717_v0 }
 0x43f   : > { %1151 = vmatmul.mubr.msk.f32.vlgmr.msra.gmra.mrb[2].mxu0 %vm737_vm4, %v721_v1 }
 0x512   : > { %v1152_v11 = vpop.f32.mrb[2].mxu0 }
 0x513   : > { %v816_v12 = vadd.f32 %v1152_v11, %v1075_v10  ;;  %v810_v13 = vpop.f32.mrb[3].mxu0 }
 0x514   : > { %v811_v14 = vadd.f32 %v1075_v10, %v810_v13 }
 0x515   : > { %v820_v15 = vmax.f32 %v816_v12, 0.0 }
 0x516   : > { %v819_v16 = vmax.f32 %v811_v14, 0.0 }
 0x517   : > { %v822_v17 = vmul.f32 %v820_v15, %v1494_v41 }
 0x518   : > { %v821_v18 = vmul.f32 %v819_v16, %v1496_v43 }
 0x519   : > { %v824_v19 = vsel %vm634_vm3, %v822_v17, -inf }
 0x51a   : > { %v823_v20 = vsel %vm634_vm3, %v821_v18, -inf }
 0x51b   : > { %v825_v21 = vmax.f32 %v823_v20, %v824_v19 }
 0x51d   : > { %v826_v22 = vrot.slane %v825_v21, 4 }
 0x51f   : > { %v827_v23 = vmax.f32 %v825_v21, %v826_v22 }
 0x521   : > { %v828_v24 = vrot.slane %v827_v23, 2 }
 0x523   : > { %v829_v25 = vmax.f32 %v827_v23, %v828_v24 }
 0x525   : > { %v830_v26 = vrot.slane %v829_v25, 1 }
 0x527   : > { %v831_v27 = vmax.f32 %v829_v25, %v830_v26 }
 0x529   : > { %1162 = vmatmul.mubr.msk.f32.vlgmr.msra.gmra.mrb[4].mxu1 %vm634_vm3, %v831_v27 }
 0x52a   : > { %1267 = shalt.err (!%p1264_p3)
}
 0x52b   : > { %s1268_s0 = scalar_lea.hbm %s1560_s20, 256  ;;  %s1272_s18 = scalar_lea.hbm %s1647_s10, 512 }
 0x52c   : > { %p1269_p4 = scmp.ne.s32.totalorder %s1560_s20, %s1268_s0  ;;  %p1273_p9 = scmp.lt.u32.totalorder %s1560_s20, %s1647_s10 }
 0x52d   : > { %p1274_p10 = scmp.lt.u32.totalorder %s1272_s18, %s1268_s0  ;;  %p1276_p12 = scmp.lt.u32.totalorder %s1268_s0, %s1560_s20 }
 0x52e   : > { %p1270_p7 = pnand %p1269_p4, %p1453_p5 }
 0x52f   : > { %p1275_p11 = por %p1274_p10, %p1273_p9 }
 0x530   : > { %p1271_p8 = pneg %p1270_p7 }
 0x531   : > { %p1277_p13 = por %p1276_p12, %p1275_p11 }
 0x533   : > { %p1278_p0 = pnand %p1277_p13, %p1271_p8 }
 0x535   : > { %1281 = shalt.err (!%p1278_p0)
}
 0x536   : > { %s1357_s25 = smov 128   ;;  %s1358_s12 = smov 8   ;;  %v836_v28 = vld [vmem:[%s1645_s8] sm:$0x1]  ;;  %vm910_vm6 = vcmask 16384  }
 0x537   : > { %1195 = dma.vmem_to_hbm [thread:$0]  (%p1453_p5), %s1554_s26, 256, %s1560_s20, %s917_s21, %s1357_s25, %s1357_s25, %s1358_s12  }
 0x538   : > { %s1080_s0 = sshll.u32 %s1436_s17, 4  ;;  %s385_s18 = scalar_lea.vmem [#allocation2], %s1491_s30 }
 0x539   : > { %s930_s27 = sshll.u32 %s385_s18, 4  ;;  %s1594_s2 = scalar_lea.hbm %s1646_s9, %s1080_s0  ;;  %s1596_s27 = int_to_ptr.vmem [resolvable:$true] %s930_s27 }
 0x53a   : > { %s913_s26 = scalar_lea.sflag [#allocation3], %s1491_s30  ;;  %s1282_s20 = scalar_lea.vmem %s1596_s27, 16 }
 0x53b   : > { %p1283_p1 = scmp.ne.s32.totalorder %s1596_s27, %s1282_s20  ;;  %s1359_s17 = smov [#allocation2]  }
 0x53c   : > { %s1286_s21 = sshll.u32 %s1359_s17, 4  ;;  %s1287_s21 = int_to_ptr.vmem [resolvable:$false] %s1286_s21 }
 0x53d   : > { %p1284_p2 = pnand %p1283_p1, %p1453_p5  ;;  %s1288_s25 = scalar_lea.vmem %s1287_s21, 32 }
 0x53e   : > { %p1289_p4 = scmp.lt.s32.totalorder %s1596_s27, %s1287_s21  ;;  %p1290_p7 = scmp.lt.s32.totalorder %s1288_s25, %s1282_s20 }
 0x53f   : > { %p1285_p3 = pneg %p1284_p2 }
 0x540   : > { %p1291_p8 = por %p1290_p7, %p1289_p4 }
 0x542   : > { %p1292_p9 = pnand %p1291_p8, %p1285_p3 }
 0x5fc   : > { %v906_v29 = vpop.f32.mrb[4].mxu1 }
 0x5fd   : > { %v907_v30 = vadd.f32 %v906_v29, %v836_v28  ;;  %v1163_v31 = vpop.f32.mrb[5].mxu1 }
 0x5ff   : > { %911 = vst.msk [vmem:[%s385_s18] sm:$0x1] %vm910_vm6, %v907_v30 }
 0x600   : > { %1295 = shalt.err (!%p1292_p9)
}
 0x601   : > { %s1296_s1 = scalar_lea.hbm %s1594_s2, 16  ;;  %s1300_s29 = scalar_lea.hbm %s1646_s9, 32 }
 0x602   : > { %p1297_p10 = scmp.ne.s32.totalorder %s1594_s2, %s1296_s1  ;;  %p1301_p13 = scmp.lt.u32.totalorder %s1594_s2, %s1646_s9 }
 0x603   : > { %p1302_p0 = scmp.lt.u32.totalorder %s1300_s29, %s1296_s1  ;;  %p1304_p2 = scmp.lt.u32.totalorder %s1296_s1, %s1594_s2 }
 0x604   : > { %p1298_p11 = pnand %p1297_p10, %p1453_p5 }
 0x605   : > { %p1303_p1 = por %p1302_p0, %p1301_p13 }
 0x606   : > { %p1299_p12 = pneg %p1298_p11 }
 0x607   : > { %p1305_p3 = por %p1304_p2, %p1303_p1 }
 0x609   : > { %p1306_p4 = pnand %p1305_p3, %p1299_p12 }
 0x60b   : > { %1309 = shalt.err (!%p1306_p4)
}
 0x60c   : > { %1194 = dma.vmem_to_hbm [thread:$0]  (%p1453_p5), %s1596_s27, 16, %s1594_s2, %s913_s26  }
 0x60d PF: > { %p1205_p7 = scmp.ge.s32.totalorder %s1348_s16, 2  ;;  %s958_s18 = sand.u32 1, %s1336_s13  }
 0x60e   : > { %s959_s28 = scalar_lea.sflag [#allocation3], %s958_s18 }
 0x60f   : > { %p1199_p8 = pnand %p1205_p7, %p1457_p6 }
 0x611   : > { %1327 = dma.done.wait (!%p1199_p8), %s959_s28, 16  }
 0x612   : > { %1329 = vsyncadd (!%p1199_p8), %s959_s28, 4294967280  ;;  %s967_s20 = scalar_lea.sflag [#allocation5], %s958_s18 }
 0x613   : > { %1331 = dma.done.wait (!%p1199_p8), %s967_s20, 256  }
 0x614   : > { %1333 = vsyncadd (!%p1199_p8), %s967_s20, 4294967040  ;;  %p24_p5 = scmp.ge.s32.totalorder %s1440_s19, 4   ;;  %s1656_s13 = smov %s1340_s14 }
 0x615   : > { %s1657_s14 = smov %s1344_s15  ;;  %s1658_s15 = smov %s1451_s22 }
 0x616   : > { %s1659_s16 = smov %s1440_s19  ;;  %26 = sbr.rel (!%p24_p5) target bundleno = 9 (0x9), region = 114 }
 0x61d   :  { %972 = vsyncpa [#allocation3], 1 }
 0x61e   :  { %974 = vsyncpa [#allocation3 + $0x1], 1 }
 0x61f   :  { %975 = vsyncpa [#allocation5], 1 }
 0x620   :  { %977 = vsyncpa [#allocation5 + $0x1], 1 }

</bundles_post_ra>
